<compile_context>
chip_gen: v7x
topology: tpu7x:2x2x1
jax: 0.10.0
libtpu: 0.0.40
codegen_flags: <defaults>
</compile_context>

<pallas_src>
import functools
import math

import jax
import jax.numpy as jnp
from jax import lax
from jax.experimental import pallas as pl
from jax.experimental.pallas import tpu as pltpu


# Column layout inside the packed (Cout, 8) bias operand.
_B1, _B2, _FB1, _FB2, _BSC = 0, 1, 2, 3, 4


# ----------------------------- Pallas kernel --------------------------------
def _make_kernel(*, stride, l_in, l_out, b_blk, cin, cout, has_proj):
    """Fused BasicBlock kernel; all layout/config is static (closure).

    Lane layout inside a block: lane = position * b_blk + sample, so
      * chunk p (lanes [p*b_blk, (p+1)*b_blk)) holds all samples at position p,
      * shifting / gathering whole chunks never mixes samples (no masks needed),
      * per-sample reductions and broadcasts are chunk-wise adds / concats.
    """

    def kernel(*refs):
        if has_proj:
            (x_ref, w1_ref, w2_ref, fw1_ref, fw2_ref, wsc_ref, bias_ref, out_ref) = refs
        else:
            (x_ref, w1_ref, w2_ref, fw1_ref, fw2_ref, bias_ref, out_ref) = refs

        f32 = jnp.float32
        x = x_ref[...].astype(f32)                        # (Cin, L_in * b_blk)

        def chunk(a, p):                                  # all samples at position p
            return a[:, p * b_blk:(p + 1) * b_blk]

        def shift_next(a, zero):                          # value at position p-1 (zero at p=0)
            return jnp.concatenate([zero, a[:, :a.shape[1] - b_blk]], axis=1)

        def shift_prev(a, zero):                          # value at position p+1 (zero at last)
            return jnp.concatenate([a[:, b_blk:], zero], axis=1)

        zin = jnp.zeros((cin, b_blk), f32)

        # ---- conv1 taps (tap k reads input position o*stride + k - 1, zero-padded) ----
        if stride == 1:
            xc = x
            xl = shift_next(x, zin)
            xr = shift_prev(x, zin)
        else:
            def tap(off):
                pieces = []
                for o in range(l_out):
                    p = o * stride + off
                    pieces.append(zin if (p < 0 or p >= l_in) else chunk(x, p))
                return jnp.concatenate(pieces, axis=1)
            xl, xc, xr = tap(-1), tap(0), tap(1)

        # ---- conv1 (BN1 scale folded into weights) + bias + ReLU ----
        h = jnp.dot(w1_ref[1], xc, preferred_element_type=f32)
        h = h + jnp.dot(w1_ref[0], xl, preferred_element_type=f32)
        h = h + jnp.dot(w1_ref[2], xr, preferred_element_type=f32)
        h1 = jnp.maximum(h + bias_ref[:, _B1:_B1 + 1], 0.0)

        # ---- conv2 (k=3, stride 1, pad 1; BN2 scale folded) + bias ----
        zout = jnp.zeros((cout, b_blk), f32)
        h2 = jnp.dot(w2_ref[1], h1, preferred_element_type=f32)
        h2 = h2 + jnp.dot(w2_ref[0], shift_next(h1, zout), preferred_element_type=f32)
        h2 = h2 + jnp.dot(w2_ref[2], shift_prev(h1, zout), preferred_element_type=f32)
        h2 = h2 + bias_ref[:, _B2:_B2 + 1]

        # ---- Shrinkage: per-sample GAP -> fc -> soft threshold ----
        x_abs = jnp.abs(h2)
        sums = [chunk(x_abs, o) for o in range(l_out)]    # pairwise tree of chunk adds
        while len(sums) > 1:
            nxt = [a + b for a, b in zip(sums[0::2], sums[1::2])]
            if len(sums) % 2:
                nxt.append(sums[-1])
            sums = nxt
        gap = sums[0] * (1.0 / l_out)                     # (Cout, b_blk) per-sample GAP
        avg = jnp.mean(gap, axis=0, keepdims=True)        # (1, b_blk) mean over channels

        z = jnp.dot(fw1_ref[...], gap, preferred_element_type=f32) + bias_ref[:, _FB1:_FB1 + 1]
        z = jnp.maximum(z, 0.0)                           # fc1 + folded BN + ReLU
        z = jnp.dot(fw2_ref[...], z, preferred_element_type=f32) + bias_ref[:, _FB2:_FB2 + 1]
        z = pl.reciprocal(1.0 + jnp.exp(-z), approx=True)             # sigmoid (EUP slot)
        thr = jnp.concatenate([avg * z] * l_out, axis=1)              # thr at every position
        # sign(h)*max(|h|-thr, 0)  ==  h - clip(h, -thr, thr)   (thr >= 0)
        shrunk = h2 - jnp.minimum(jnp.maximum(h2, -thr), thr)

        # ---- shortcut ----
        if has_proj:
            # strided 1x1 projection reads exactly the centre tap (already gathered)
            ysc = (jnp.dot(wsc_ref[...], xc, preferred_element_type=f32)
                   + bias_ref[:, _BSC:_BSC + 1])
        else:
            ysc = x                                       # identity: stride 1, Cin == Cout

        out_ref[...] = jnp.maximum(shrunk + ysc, 0.0).astype(out_ref.dtype)

    return kernel


# ------------------------------ wrapper --------------------------------------
def _bn_fold(gamma, beta, mean, var, eps=1e-5):
    s = gamma / jnp.sqrt(var + eps)
    return s, beta - mean * s


def _choose_batch_block(n, l_in, l_out, target_lanes, min_blocks):
    """Samples per grid block: both L_in*b and L_out*b lane dims must be multiples of 128;
    prefer >= min_blocks grid steps (v7x megacore) and ~target_lanes output lanes per step."""
    b_min = max(128 // math.gcd(l_in, 128), 128 // math.gcd(l_out, 128))
    b_blk = b_min * max(1, target_lanes // (b_min * l_out))
    if min_blocks > 1:
        cap = ((n // min_blocks) // b_min) * b_min        # largest block keeping >= min_blocks
        if cap >= b_min:
            b_blk = min(b_blk, cap)
    b_blk = min(b_blk, b_min * (-(-n // b_min)))          # never exceed the padded batch
    grid = -(-n // b_blk)
    return b_blk, grid


def _to_kernel_layout(x, b_blk, grid, dtype):
    """(N, C, L) -> (C, grid*L*b_blk) with lane = position*b_blk + sample inside each block."""
    n, c, l = x.shape
    n_pad = b_blk * grid
    xt = x.astype(dtype)
    if n_pad > n:
        xt = jnp.pad(xt, ((0, n_pad - n), (0, 0), (0, 0)))
    return xt.reshape(grid, b_blk, c, l).transpose(2, 0, 3, 1).reshape(c, grid * l * b_blk)


def _from_kernel_layout(y, n, b_blk, grid, l_out):
    """Inverse of _to_kernel_layout for the (Cout, grid*L_out*b_blk) kernel output."""
    c = y.shape[0]
    y = y.reshape(c, grid, l_out, b_blk).transpose(1, 3, 0, 2)
    return y.reshape(grid * b_blk, c, l_out)[:n]


def basic_block_forward(x, p, stride, *, target_lanes=4096, min_blocks=2,
                        activation_dtype=jnp.float32):
    """x: (N, Cin, L) float32 -> (N, Cout, Lout) float32 (eval-mode BatchNorm)."""
    n, cin, l_in = x.shape
    cout = p["w1"].shape[0]
    l_out = (l_in - 1) // stride + 1
    has_proj = (stride != 1) or (cin != cout)
    f32 = jnp.float32

    b_blk, grid = _choose_batch_block(n, l_in, l_out, target_lanes, min_blocks)
    t_in, t_out = l_in * b_blk, l_out * b_blk

    # Entry layout glue (one transpose).  For chained BasicBlocks keep activations in the
    # kernel layout between layers and apply this only at network entry / exit.
    xin = _to_kernel_layout(x, b_blk, grid, activation_dtype)

    # ---- fold BN scales into weights; pack the per-channel biases into one small operand ----
    s1, b1 = _bn_fold(p["bn1_g"], p["bn1_b"], p["bn1_m"], p["bn1_v"])
    s2, b2 = _bn_fold(p["bn2_g"], p["bn2_b"], p["bn2_m"], p["bn2_v"])
    fbs, fbb = _bn_fold(p["fbn_g"], p["fbn_b"], p["fbn_m"], p["fbn_v"])
    w1_op = jnp.transpose(p["w1"] * s1[:, None, None], (2, 0, 1)).astype(f32)   # (3, Cout, Cin)
    w2_op = jnp.transpose(p["w2"] * s2[:, None, None], (2, 0, 1)).astype(f32)   # (3, Cout, Cout)
    fw1_op = (p["fw1"] * fbs[:, None]).astype(f32)
    fw2_op = p["fw2"].astype(f32)

    if has_proj:
        ssc, bsc = _bn_fold(p["bnsc_g"], p["bnsc_b"], p["bnsc_m"], p["bnsc_v"])
        wsc_op = (p["wsc"] * ssc[:, None]).astype(f32)
    else:
        bsc = jnp.zeros((cout,), f32)

    bias = jnp.zeros((cout, 8), f32)
    bias = bias.at[:, _B1].set(b1).at[:, _B2].set(b2)
    bias = bias.at[:, _FB1].set(fbs * p["fb1"] + fbb).at[:, _FB2].set(p["fb2"])
    bias = bias.at[:, _BSC].set(bsc)

    operands = [xin, w1_op, w2_op, fw1_op, fw2_op]
    if has_proj:
        operands.append(wsc_op)
    operands.append(bias)

    def const_spec(a):                      # small constant operand, same block every step
        return pl.BlockSpec(a.shape, lambda i, _nd=a.ndim: (0,) * _nd)

    in_specs = [pl.BlockSpec((cin, t_in), lambda i: (0, i))]
    in_specs += [const_spec(a) for a in operands[1:]]

    kernel = _make_kernel(stride=stride, l_in=l_in, l_out=l_out, b_blk=b_blk,
                          cin=cin, cout=cout, has_proj=has_proj)

    out_flat = pl.pallas_call(
        kernel,
        out_shape=jax.ShapeDtypeStruct((cout, grid * t_out), f32),
        grid_spec=pltpu.PrefetchScalarGridSpec(
            num_scalar_prefetch=0,
            grid=(grid,),
            in_specs=in_specs,
            out_specs=pl.BlockSpec((cout, t_out), lambda i: (0, i)),
        ),
        compiler_params=pltpu.CompilerParams(
            dimension_semantics=("parallel",),
            vmem_limit_bytes=32 * 1024 * 1024,
        ),
    )(*operands)

    # Exit layout glue (one transpose back to (N, Cout, Lout)).
    return _from_kernel_layout(out_flat, n, b_blk, grid, l_out)


# --------------------------- pure-JAX reference ------------------------------
def reference_forward(x, p, stride):
    dn = ("NCH", "OIH", "NCH")
    cin = x.shape[1]
    cout = p["w1"].shape[0]

    def bn(y, g, b, m, v):
        s, bias = _bn_fold(g, b, m, v)
        return y * s[None, :, None] + bias[None, :, None]

    h = lax.conv_general_dilated(x, p["w1"], (stride,), ((1, 1),), dimension_numbers=dn)
    h = jnp.maximum(bn(h, p["bn1_g"], p["bn1_b"], p["bn1_m"], p["bn1_v"]), 0.0)
    h = lax.conv_general_dilated(h, p["w2"], (1,), ((1, 1),), dimension_numbers=dn)
    h = bn(h, p["bn2_g"], p["bn2_b"], p["bn2_m"], p["bn2_v"])

    # Shrinkage
    x_abs = jnp.abs(h)
    gap = jnp.mean(x_abs, axis=2)                     # (N, C)
    avg = jnp.mean(gap, axis=1, keepdims=True)        # (N, 1)
    fbs, fbb = _bn_fold(p["fbn_g"], p["fbn_b"], p["fbn_m"], p["fbn_v"])
    z = gap @ p["fw1"].T + p["fb1"]
    z = jnp.maximum(z * fbs[None, :] + fbb[None, :], 0.0)
    z = z @ p["fw2"].T + p["fb2"]
    z = jax.nn.sigmoid(z)
    thr = (avg * z)[:, :, None]
    shrunk = jnp.sign(h) * jnp.maximum(x_abs - thr, 0.0)

    if stride != 1 or cin != cout:
        sc = lax.conv_general_dilated(x, p["wsc"][:, :, None], (stride,), ((0, 0),),
                                      dimension_numbers=dn)
        sc = bn(sc, p["bnsc_g"], p["bnsc_b"], p["bnsc_m"], p["bnsc_v"])
    else:
        sc = x
    return jnp.maximum(shrunk + sc, 0.0)


# ------------------------------ param init -----------------------------------
def init_params(key, cin, cout):
    ks = iter(jax.random.split(key, 32))
    nrm = lambda shape, s=0.2: s * jax.random.normal(next(ks), shape, jnp.float32)

    def bn_params(c):
        return dict(
            g=1.0 + nrm((c,), 0.1),
            b=nrm((c,), 0.1),
            m=nrm((c,), 0.1),
            v=1.0 + 0.1 * jnp.abs(jax.random.normal(next(ks), (c,), jnp.float32)),
        )

    p = {}
    p["w1"] = nrm((cout, cin, 3))
    bn1 = bn_params(cout)
    p.update(bn1_g=bn1["g"], bn1_b=bn1["b"], bn1_m=bn1["m"], bn1_v=bn1["v"])
    p["w2"] = nrm((cout, cout, 3))
    bn2 = bn_params(cout)
    p.update(bn2_g=bn2["g"], bn2_b=bn2["b"], bn2_m=bn2["m"], bn2_v=bn2["v"])
    # Shrinkage fc: Linear(C,C) -> BN1d(C) -> ReLU -> Linear(C,C) -> Sigmoid
    p["fw1"] = nrm((cout, cout))
    p["fb1"] = nrm((cout,), 0.1)
    fbn = bn_params(cout)
    p.update(fbn_g=fbn["g"], fbn_b=fbn["b"], fbn_m=fbn["m"], fbn_v=fbn["v"])
    p["fw2"] = nrm((cout, cout))
    p["fb2"] = nrm((cout,), 0.1)
    # shortcut projection (used when stride != 1 or cin != cout)
    p["wsc"] = nrm((cout, cin))
    bns = bn_params(cout)
    p.update(bnsc_g=bns["g"], bnsc_b=bns["b"], bnsc_m=bns["m"], bnsc_v=bns["v"])
    return p


# --------------------------------- main ---------------------------------------
if __name__ == "__main__":
    key = jax.random.PRNGKey(0)
    configs = [
        # (N,  Cin, Cout, L,  stride, activation_dtype, tol)
        (16, 4,   8,    16, 2, jnp.float32,  2e-3),   # strided conv1 + projection shortcut
        (8,  8,   8,    16, 1, jnp.float32,  2e-3),   # identity shortcut
        (42, 4,   8,    32, 1, jnp.float32,  2e-3),   # multi-block grid, batch padding, 1x1 proj
        (32, 8,   16,   64, 2, jnp.bfloat16, 3e-2),   # bf16 activation DMA, 2 parallel blocks
    ]
    for (n_, cin_, cout_, l_, s_, dt_, tol_) in configs:
        key, k_x, k_p = jax.random.split(key, 3)
        x = jax.random.normal(k_x, (n_, cin_, l_), jnp.float32)
        params = init_params(k_p, cin_, cout_)

        fwd = jax.jit(functools.partial(basic_block_forward, stride=s_,
                                        activation_dtype=dt_))
        out = jax.block_until_ready(fwd(x, params))

        ref = reference_forward(x, params, s_)
        lout_ = (l_ - 1) // s_ + 1
        assert out.shape == ref.shape == (n_, cout_, lout_)
        assert bool(jnp.allclose(out, ref, atol=tol_, rtol=tol_)), \
            f"mismatch vs reference for config {(n_, cin_, cout_, l_, s_, dt_)}"

    print("KERNEL_OK")
</pallas_src>

<mosaic_0001>
module attributes {stable_mosaic.version = 11 : i64} {
  func.func @kernel(%arg0: i32, %arg1: memref<4x256xf32, #tpu.memory_space<vmem>>, %arg2: memref<3x8x4xf32, #tpu.memory_space<vmem>>, %arg3: memref<3x8x8xf32, #tpu.memory_space<vmem>>, %arg4: memref<8x8xf32, #tpu.memory_space<vmem>>, %arg5: memref<8x8xf32, #tpu.memory_space<vmem>>, %arg6: memref<8x4xf32, #tpu.memory_space<vmem>>, %arg7: memref<8x8xf32, #tpu.memory_space<vmem>>, %arg8: memref<8x128xf32, #tpu.memory_space<vmem>>) attributes {dimension_semantics = [#tpu.dimension_semantics<parallel>], iteration_bounds = array<i64: 1>, scalar_prefetch = 0 : i64, scratch_operands = 0 : i64, tpu.core_type = #tpu.core_type<tc>, window_params = [{transform_indices = @transform_0, window_bounds = array<i64: 4, 256>}, {pipeline_mode = #tpu.pipeline_mode<synchronous>, transform_indices = @transform_1, window_bounds = array<i64: 3, 8, 4>}, {pipeline_mode = #tpu.pipeline_mode<synchronous>, transform_indices = @transform_2, window_bounds = array<i64: 3, 8, 8>}, {pipeline_mode = #tpu.pipeline_mode<synchronous>, transform_indices = @transform_3, window_bounds = array<i64: 8, 8>}, {pipeline_mode = #tpu.pipeline_mode<synchronous>, transform_indices = @transform_4, window_bounds = array<i64: 8, 8>}, {pipeline_mode = #tpu.pipeline_mode<synchronous>, transform_indices = @transform_5, window_bounds = array<i64: 8, 4>}, {pipeline_mode = #tpu.pipeline_mode<synchronous>, transform_indices = @transform_6, window_bounds = array<i64: 8, 8>}, {transform_indices = @transform_7, window_bounds = array<i64: 8, 128>}]} {
    %c0 = arith.constant 0 : index
    %c0_0 = arith.constant 0 : index
    %0 = vector.load %arg1[%c0, %c0_0] : memref<4x256xf32, #tpu.memory_space<vmem>>, vector<4x256xf32>
    %cst = arith.constant 0.000000e+00 : f32
    %1 = vector.broadcast %cst : f32 to vector<4x16xf32>
    %2 = vector.extract_strided_slice %0 {offsets = [0, 16], sizes = [4, 16], strides = [1, 1]} : vector<4x256xf32> to vector<4x16xf32>
    %3 = vector.extract_strided_slice %0 {offsets = [0, 48], sizes = [4, 16], strides = [1, 1]} : vector<4x256xf32> to vector<4x16xf32>
    %4 = vector.extract_strided_slice %0 {offsets = [0, 80], sizes = [4, 16], strides = [1, 1]} : vector<4x256xf32> to vector<4x16xf32>
    %5 = vector.extract_strided_slice %0 {offsets = [0, 112], sizes = [4, 16], strides = [1, 1]} : vector<4x256xf32> to vector<4x16xf32>
    %6 = vector.extract_strided_slice %0 {offsets = [0, 144], sizes = [4, 16], strides = [1, 1]} : vector<4x256xf32> to vector<4x16xf32>
    %7 = vector.extract_strided_slice %0 {offsets = [0, 176], sizes = [4, 16], strides = [1, 1]} : vector<4x256xf32> to vector<4x16xf32>
    %8 = vector.extract_strided_slice %0 {offsets = [0, 208], sizes = [4, 16], strides = [1, 1]} : vector<4x256xf32> to vector<4x16xf32>
    %9 = tpu.concatenate %1, %2, %3, %4, %5, %6, %7, %8 in 1 : vector<4x16xf32>, vector<4x16xf32>, vector<4x16xf32>, vector<4x16xf32>, vector<4x16xf32>, vector<4x16xf32>, vector<4x16xf32>, vector<4x16xf32> -> vector<4x128xf32>
    %10 = vector.extract_strided_slice %0 {offsets = [0, 0], sizes = [4, 16], strides = [1, 1]} : vector<4x256xf32> to vector<4x16xf32>
    %11 = vector.extract_strided_slice %0 {offsets = [0, 32], sizes = [4, 16], strides = [1, 1]} : vector<4x256xf32> to vector<4x16xf32>
    %12 = vector.extract_strided_slice %0 {offsets = [0, 64], sizes = [4, 16], strides = [1, 1]} : vector<4x256xf32> to vector<4x16xf32>
    %13 = vector.extract_strided_slice %0 {offsets = [0, 96], sizes = [4, 16], strides = [1, 1]} : vector<4x256xf32> to vector<4x16xf32>
    %14 = vector.extract_strided_slice %0 {offsets = [0, 128], sizes = [4, 16], strides = [1, 1]} : vector<4x256xf32> to vector<4x16xf32>
    %15 = vector.extract_strided_slice %0 {offsets = [0, 160], sizes = [4, 16], strides = [1, 1]} : vector<4x256xf32> to vector<4x16xf32>
    %16 = vector.extract_strided_slice %0 {offsets = [0, 192], sizes = [4, 16], strides = [1, 1]} : vector<4x256xf32> to vector<4x16xf32>
    %17 = vector.extract_strided_slice %0 {offsets = [0, 224], sizes = [4, 16], strides = [1, 1]} : vector<4x256xf32> to vector<4x16xf32>
    %18 = tpu.concatenate %10, %11, %12, %13, %14, %15, %16, %17 in 1 : vector<4x16xf32>, vector<4x16xf32>, vector<4x16xf32>, vector<4x16xf32>, vector<4x16xf32>, vector<4x16xf32>, vector<4x16xf32>, vector<4x16xf32> -> vector<4x128xf32>
    %19 = vector.extract_strided_slice %0 {offsets = [0, 16], sizes = [4, 16], strides = [1, 1]} : vector<4x256xf32> to vector<4x16xf32>
    %20 = vector.extract_strided_slice %0 {offsets = [0, 48], sizes = [4, 16], strides = [1, 1]} : vector<4x256xf32> to vector<4x16xf32>
    %21 = vector.extract_strided_slice %0 {offsets = [0, 80], sizes = [4, 16], strides = [1, 1]} : vector<4x256xf32> to vector<4x16xf32>
    %22 = vector.extract_strided_slice %0 {offsets = [0, 112], sizes = [4, 16], strides = [1, 1]} : vector<4x256xf32> to vector<4x16xf32>
    %23 = vector.extract_strided_slice %0 {offsets = [0, 144], sizes = [4, 16], strides = [1, 1]} : vector<4x256xf32> to vector<4x16xf32>
    %24 = vector.extract_strided_slice %0 {offsets = [0, 176], sizes = [4, 16], strides = [1, 1]} : vector<4x256xf32> to vector<4x16xf32>
    %25 = vector.extract_strided_slice %0 {offsets = [0, 208], sizes = [4, 16], strides = [1, 1]} : vector<4x256xf32> to vector<4x16xf32>
    %26 = vector.extract_strided_slice %0 {offsets = [0, 240], sizes = [4, 16], strides = [1, 1]} : vector<4x256xf32> to vector<4x16xf32>
    %27 = tpu.concatenate %19, %20, %21, %22, %23, %24, %25, %26 in 1 : vector<4x16xf32>, vector<4x16xf32>, vector<4x16xf32>, vector<4x16xf32>, vector<4x16xf32>, vector<4x16xf32>, vector<4x16xf32>, vector<4x16xf32> -> vector<4x128xf32>
    %c1 = arith.constant 1 : index
    %c0_1 = arith.constant 0 : index
    %c0_2 = arith.constant 0 : index
    %28 = vector.load %arg2[%c1, %c0_1, %c0_2] : memref<3x8x4xf32, #tpu.memory_space<vmem>>, vector<1x8x4xf32>
    %29 = vector.shape_cast %28 : vector<1x8x4xf32> to vector<8x4xf32>
    %cst_3 = arith.constant dense<0.000000e+00> : vector<8x128xf32>
    %30 = tpu.matmul %29, %18, %cst_3 {dimension_numbers = #tpu.dot_dimension_numbers<[1], [0], [0], [1], [0, 0, 1, 1], [], []>} : vector<8x4xf32>, vector<4x128xf32>, vector<8x128xf32> -> vector<8x128xf32>
    %c0_4 = arith.constant 0 : index
    %c0_5 = arith.constant 0 : index
    %c0_6 = arith.constant 0 : index
    %31 = vector.load %arg2[%c0_4, %c0_5, %c0_6] : memref<3x8x4xf32, #tpu.memory_space<vmem>>, vector<1x8x4xf32>
    %32 = vector.shape_cast %31 : vector<1x8x4xf32> to vector<8x4xf32>
    %cst_7 = arith.constant dense<0.000000e+00> : vector<8x128xf32>
    %33 = tpu.matmul %32, %9, %cst_7 {dimension_numbers = #tpu.dot_dimension_numbers<[1], [0], [0], [1], [0, 0, 1, 1], [], []>} : vector<8x4xf32>, vector<4x128xf32>, vector<8x128xf32> -> vector<8x128xf32>
    %34 = arith.addf %30, %33 : vector<8x128xf32>
    %c2 = arith.constant 2 : index
    %c0_8 = arith.constant 0 : index
    %c0_9 = arith.constant 0 : index
    %35 = vector.load %arg2[%c2, %c0_8, %c0_9] : memref<3x8x4xf32, #tpu.memory_space<vmem>>, vector<1x8x4xf32>
    %36 = vector.shape_cast %35 : vector<1x8x4xf32> to vector<8x4xf32>
    %cst_10 = arith.constant dense<0.000000e+00> : vector<8x128xf32>
    %37 = tpu.matmul %36, %27, %cst_10 {dimension_numbers = #tpu.dot_dimension_numbers<[1], [0], [0], [1], [0, 0, 1, 1], [], []>} : vector<8x4xf32>, vector<4x128xf32>, vector<8x128xf32> -> vector<8x128xf32>
    %38 = arith.addf %34, %37 : vector<8x128xf32>
    %c0_11 = arith.constant 0 : index
    %c0_12 = arith.constant 0 : index
    %39 = vector.load %arg7[%c0_11, %c0_12] : memref<8x8xf32, #tpu.memory_space<vmem>>, vector<8x1xf32>
    %40 = vector.broadcast %39 : vector<8x1xf32> to vector<8x128xf32>
    %41 = arith.addf %38, %40 : vector<8x128xf32>
    %cst_13 = arith.constant 0.000000e+00 : f32
    %42 = vector.broadcast %cst_13 : f32 to vector<8x128xf32>
    %43 = arith.maximumf %41, %42 : vector<8x128xf32>
    %cst_14 = arith.constant 0.000000e+00 : f32
    %44 = vector.broadcast %cst_14 : f32 to vector<8x16xf32>
    %c1_15 = arith.constant 1 : index
    %c0_16 = arith.constant 0 : index
    %c0_17 = arith.constant 0 : index
    %45 = vector.load %arg3[%c1_15, %c0_16, %c0_17] : memref<3x8x8xf32, #tpu.memory_space<vmem>>, vector<1x8x8xf32>
    %46 = vector.shape_cast %45 : vector<1x8x8xf32> to vector<8x8xf32>
    %cst_18 = arith.constant dense<0.000000e+00> : vector<8x128xf32>
    %47 = tpu.matmul %46, %43, %cst_18 {dimension_numbers = #tpu.dot_dimension_numbers<[1], [0], [0], [1], [0, 0, 1, 1], [], []>} : vector<8x8xf32>, vector<8x128xf32>, vector<8x128xf32> -> vector<8x128xf32>
    %c0_19 = arith.constant 0 : index
    %c0_20 = arith.constant 0 : index
    %c0_21 = arith.constant 0 : index
    %48 = vector.load %arg3[%c0_19, %c0_20, %c0_21] : memref<3x8x8xf32, #tpu.memory_space<vmem>>, vector<1x8x8xf32>
    %49 = vector.shape_cast %48 : vector<1x8x8xf32> to vector<8x8xf32>
    %50 = vector.extract_strided_slice %43 {offsets = [0, 0], sizes = [8, 112], strides = [1, 1]} : vector<8x128xf32> to vector<8x112xf32>
    %51 = tpu.concatenate %44, %50 in 1 : vector<8x16xf32>, vector<8x112xf32> -> vector<8x128xf32>
    %cst_22 = arith.constant dense<0.000000e+00> : vector<8x128xf32>
    %52 = tpu.matmul %49, %51, %cst_22 {dimension_numbers = #tpu.dot_dimension_numbers<[1], [0], [0], [1], [0, 0, 1, 1], [], []>} : vector<8x8xf32>, vector<8x128xf32>, vector<8x128xf32> -> vector<8x128xf32>
    %53 = arith.addf %47, %52 : vector<8x128xf32>
    %c2_23 = arith.constant 2 : index
    %c0_24 = arith.constant 0 : index
    %c0_25 = arith.constant 0 : index
    %54 = vector.load %arg3[%c2_23, %c0_24, %c0_25] : memref<3x8x8xf32, #tpu.memory_space<vmem>>, vector<1x8x8xf32>
    %55 = vector.shape_cast %54 : vector<1x8x8xf32> to vector<8x8xf32>
    %56 = vector.extract_strided_slice %43 {offsets = [0, 16], sizes = [8, 112], strides = [1, 1]} : vector<8x128xf32> to vector<8x112xf32>
    %57 = tpu.concatenate %56, %44 in 1 : vector<8x112xf32>, vector<8x16xf32> -> vector<8x128xf32>
    %cst_26 = arith.constant dense<0.000000e+00> : vector<8x128xf32>
    %58 = tpu.matmul %55, %57, %cst_26 {dimension_numbers = #tpu.dot_dimension_numbers<[1], [0], [0], [1], [0, 0, 1, 1], [], []>} : vector<8x8xf32>, vector<8x128xf32>, vector<8x128xf32> -> vector<8x128xf32>
    %59 = arith.addf %53, %58 : vector<8x128xf32>
    %c0_27 = arith.constant 0 : index
    %c1_28 = arith.constant 1 : index
    %60 = vector.load %arg7[%c0_27, %c1_28] : memref<8x8xf32, #tpu.memory_space<vmem>>, vector<8x1xf32>
    %61 = vector.broadcast %60 : vector<8x1xf32> to vector<8x128xf32>
    %62 = arith.addf %59, %61 : vector<8x128xf32>
    %63 = math.absf %62 : vector<8x128xf32>
    %64 = vector.extract_strided_slice %63 {offsets = [0, 0], sizes = [8, 16], strides = [1, 1]} : vector<8x128xf32> to vector<8x16xf32>
    %65 = vector.extract_strided_slice %63 {offsets = [0, 16], sizes = [8, 16], strides = [1, 1]} : vector<8x128xf32> to vector<8x16xf32>
    %66 = vector.extract_strided_slice %63 {offsets = [0, 32], sizes = [8, 16], strides = [1, 1]} : vector<8x128xf32> to vector<8x16xf32>
    %67 = vector.extract_strided_slice %63 {offsets = [0, 48], sizes = [8, 16], strides = [1, 1]} : vector<8x128xf32> to vector<8x16xf32>
    %68 = vector.extract_strided_slice %63 {offsets = [0, 64], sizes = [8, 16], strides = [1, 1]} : vector<8x128xf32> to vector<8x16xf32>
    %69 = vector.extract_strided_slice %63 {offsets = [0, 80], sizes = [8, 16], strides = [1, 1]} : vector<8x128xf32> to vector<8x16xf32>
    %70 = vector.extract_strided_slice %63 {offsets = [0, 96], sizes = [8, 16], strides = [1, 1]} : vector<8x128xf32> to vector<8x16xf32>
    %71 = vector.extract_strided_slice %63 {offsets = [0, 112], sizes = [8, 16], strides = [1, 1]} : vector<8x128xf32> to vector<8x16xf32>
    %72 = arith.addf %64, %65 : vector<8x16xf32>
    %73 = arith.addf %66, %67 : vector<8x16xf32>
    %74 = arith.addf %68, %69 : vector<8x16xf32>
    %75 = arith.addf %70, %71 : vector<8x16xf32>
    %76 = arith.addf %72, %73 : vector<8x16xf32>
    %77 = arith.addf %74, %75 : vector<8x16xf32>
    %78 = arith.addf %76, %77 : vector<8x16xf32>
    %cst_29 = arith.constant 1.250000e-01 : f32
    %79 = vector.broadcast %cst_29 : f32 to vector<8x16xf32>
    %80 = arith.mulf %78, %79 : vector<8x16xf32>
    %cst_30 = arith.constant dense<0.000000e+00> : vector<16xf32>
    %81 = vector.multi_reduction <add>, %80, %cst_30 [0] : vector<8x16xf32> to vector<16xf32>
    %82 = vector.shape_cast %81 : vector<16xf32> to vector<1x16xf32>
    %cst_31 = arith.constant 8.000000e+00 : f32
    %83 = vector.broadcast %cst_31 : f32 to vector<1x16xf32>
    %84 = arith.divf %82, %83 : vector<1x16xf32>
    %c0_32 = arith.constant 0 : index
    %c0_33 = arith.constant 0 : index
    %85 = vector.load %arg4[%c0_32, %c0_33] : memref<8x8xf32, #tpu.memory_space<vmem>>, vector<8x8xf32>
    %cst_34 = arith.constant dense<0.000000e+00> : vector<8x16xf32>
    %86 = tpu.matmul %85, %80, %cst_34 {dimension_numbers = #tpu.dot_dimension_numbers<[1], [0], [0], [1], [0, 0, 1, 1], [], []>} : vector<8x8xf32>, vector<8x16xf32>, vector<8x16xf32> -> vector<8x16xf32>
    %c0_35 = arith.constant 0 : index
    %c2_36 = arith.constant 2 : index
    %87 = vector.load %arg7[%c0_35, %c2_36] : memref<8x8xf32, #tpu.memory_space<vmem>>, vector<8x1xf32>
    %88 = vector.broadcast %87 : vector<8x1xf32> to vector<8x16xf32>
    %89 = arith.addf %86, %88 : vector<8x16xf32>
    %cst_37 = arith.constant 0.000000e+00 : f32
    %90 = vector.broadcast %cst_37 : f32 to vector<8x16xf32>
    %91 = arith.maximumf %89, %90 : vector<8x16xf32>
    %c0_38 = arith.constant 0 : index
    %c0_39 = arith.constant 0 : index
    %92 = vector.load %arg5[%c0_38, %c0_39] : memref<8x8xf32, #tpu.memory_space<vmem>>, vector<8x8xf32>
    %cst_40 = arith.constant dense<0.000000e+00> : vector<8x16xf32>
    %93 = tpu.matmul %92, %91, %cst_40 {dimension_numbers = #tpu.dot_dimension_numbers<[1], [0], [0], [1], [0, 0, 1, 1], [], []>} : vector<8x8xf32>, vector<8x16xf32>, vector<8x16xf32> -> vector<8x16xf32>
    %c0_41 = arith.constant 0 : index
    %c3 = arith.constant 3 : index
    %94 = vector.load %arg7[%c0_41, %c3] : memref<8x8xf32, #tpu.memory_space<vmem>>, vector<8x1xf32>
    %95 = vector.broadcast %94 : vector<8x1xf32> to vector<8x16xf32>
    %96 = arith.addf %93, %95 : vector<8x16xf32>
    %cst_42 = arith.constant 0.000000e+00 : f32
    %97 = vector.broadcast %cst_42 : f32 to vector<8x16xf32>
    %98 = arith.subf %97, %96 : vector<8x16xf32>
    %99 = math.exp %98 : vector<8x16xf32>
    %cst_43 = arith.constant 1.000000e+00 : f32
    %100 = vector.broadcast %cst_43 : f32 to vector<8x16xf32>
    %101 = arith.addf %100, %99 : vector<8x16xf32>
    %102 = tpu.reciprocal %101 {approx = true} : vector<8x16xf32> -> vector<8x16xf32>
    %103 = vector.broadcast %84 : vector<1x16xf32> to vector<8x16xf32>
    %104 = arith.mulf %103, %102 : vector<8x16xf32>
    %105 = tpu.concatenate %104, %104, %104, %104, %104, %104, %104, %104 in 1 : vector<8x16xf32>, vector<8x16xf32>, vector<8x16xf32>, vector<8x16xf32>, vector<8x16xf32>, vector<8x16xf32>, vector<8x16xf32>, vector<8x16xf32> -> vector<8x128xf32>
    %cst_44 = arith.constant 0.000000e+00 : f32
    %106 = vector.broadcast %cst_44 : f32 to vector<8x128xf32>
    %107 = arith.subf %106, %105 : vector<8x128xf32>
    %108 = arith.maximumf %62, %107 : vector<8x128xf32>
    %109 = arith.minimumf %108, %105 : vector<8x128xf32>
    %110 = arith.subf %62, %109 : vector<8x128xf32>
    %c0_45 = arith.constant 0 : index
    %c0_46 = arith.constant 0 : index
    %111 = vector.load %arg6[%c0_45, %c0_46] : memref<8x4xf32, #tpu.memory_space<vmem>>, vector<8x4xf32>
    %cst_47 = arith.constant dense<0.000000e+00> : vector<8x128xf32>
    %112 = tpu.matmul %111, %18, %cst_47 {dimension_numbers = #tpu.dot_dimension_numbers<[1], [0], [0], [1], [0, 0, 1, 1], [], []>} : vector<8x4xf32>, vector<4x128xf32>, vector<8x128xf32> -> vector<8x128xf32>
    %c0_48 = arith.constant 0 : index
    %c4 = arith.constant 4 : index
    %113 = vector.load %arg7[%c0_48, %c4] : memref<8x8xf32, #tpu.memory_space<vmem>>, vector<8x1xf32>
    %114 = vector.broadcast %113 : vector<8x1xf32> to vector<8x128xf32>
    %115 = arith.addf %112, %114 : vector<8x128xf32>
    %116 = arith.addf %110, %115 : vector<8x128xf32>
    %cst_49 = arith.constant 0.000000e+00 : f32
    %117 = vector.broadcast %cst_49 : f32 to vector<8x128xf32>
    %118 = arith.maximumf %116, %117 : vector<8x128xf32>
    %c0_50 = arith.constant 0 : index
    %c0_51 = arith.constant 0 : index
    %119 = vector.load %arg8[%c0_50, %c0_51] : memref<8x128xf32, #tpu.memory_space<vmem>>, vector<8x128xf32>
    tpu.vector_store %arg8[%c0_50, %c0_51], %118 {strides = array<i32>} : memref<8x128xf32, #tpu.memory_space<vmem>>, vector<8x128xf32>,
    return
  }
  func.func @transform_0(%arg0: i32) -> (i32, i32) {
    %c0_i32 = arith.constant 0 : i32
    %c0_i32_0 = arith.constant 0 : i32
    return %c0_i32, %arg0 : i32, i32
  }
  func.func @transform_1(%arg0: i32) -> (i32, i32, i32) {
    %c0_i32 = arith.constant 0 : i32
    %c0_i32_0 = arith.constant 0 : i32
    %c0_i32_1 = arith.constant 0 : i32
    %c0_i32_2 = arith.constant 0 : i32
    return %c0_i32, %c0_i32_0, %c0_i32_1 : i32, i32, i32
  }
  func.func @transform_2(%arg0: i32) -> (i32, i32, i32) {
    %c0_i32 = arith.constant 0 : i32
    %c0_i32_0 = arith.constant 0 : i32
    %c0_i32_1 = arith.constant 0 : i32
    %c0_i32_2 = arith.constant 0 : i32
    return %c0_i32, %c0_i32_0, %c0_i32_1 : i32, i32, i32
  }
  func.func @transform_3(%arg0: i32) -> (i32, i32) {
    %c0_i32 = arith.constant 0 : i32
    %c0_i32_0 = arith.constant 0 : i32
    %c0_i32_1 = arith.constant 0 : i32
    return %c0_i32, %c0_i32_0 : i32, i32
  }
  func.func @transform_4(%arg0: i32) -> (i32, i32) {
    %c0_i32 = arith.constant 0 : i32
    %c0_i32_0 = arith.constant 0 : i32
    %c0_i32_1 = arith.constant 0 : i32
    return %c0_i32, %c0_i32_0 : i32, i32
  }
  func.func @transform_5(%arg0: i32) -> (i32, i32) {
    %c0_i32 = arith.constant 0 : i32
    %c0_i32_0 = arith.constant 0 : i32
    %c0_i32_1 = arith.constant 0 : i32
    return %c0_i32, %c0_i32_0 : i32, i32
  }
  func.func @transform_6(%arg0: i32) -> (i32, i32) {
    %c0_i32 = arith.constant 0 : i32
    %c0_i32_0 = arith.constant 0 : i32
    %c0_i32_1 = arith.constant 0 : i32
    return %c0_i32, %c0_i32_0 : i32, i32
  }
  func.func @transform_7(%arg0: i32) -> (i32, i32) {
    %c0_i32 = arith.constant 0 : i32
    %c0_i32_0 = arith.constant 0 : i32
    return %c0_i32, %arg0 : i32, i32
  }
}

</mosaic_0001>

<bundles_post_ra>
// kernel: basic_block_forward.1
= control target key start
LH: loop header
LB: loop body
LE: loop exit
PB: predicated region body
PF: predicated region fallthrough
CT: control target
= control target key end

     0   :  { %s981_s26 = smov 80   ;;  %s982_s27 = smov 112   ;;  %v983_v2 = vmov 0.0   ;;  %vm984_vm0 = vmmov 0   ;;  %v987_v3 = vmov 0   ;;  %vm47_vm1 = vcmask 130048   ;;  %s1185_s0 = inlined_call_operand.vmem [shape: f32[4,256], index: 0, kind: input, shape index: {}]   ;;  %s1186_s6 = inlined_call_operand.vmem [shape: f32[8,8], index: 6, kind: input, shape index: {}]   ;;  %s1187_s1 = inlined_call_operand.vmem [shape: f32[3,8,4], index: 1, kind: input, shape index: {}]   ;;  %s1188_s2 = inlined_call_operand.vmem [shape: f32[3,8,8], index: 2, kind: input, shape index: {}]   ;;  %s1189_s3 = inlined_call_operand.vmem [shape: f32[8,8], index: 3, kind: input, shape index: {}]   ;;  %s1190_s5 = inlined_call_operand.vmem [shape: f32[8,4], index: 5, kind: input, shape index: {}]   ;;  %s1191_s4 = inlined_call_operand.vmem [shape: f32[8,8], index: 4, kind: input, shape index: {}]   ;;  %s1192_s7 = inlined_call_operand.vmem [shape: f32[8,128], index: 7, kind: output, shape index: {}]  }
   0x1   :  { %v26_v0 = vld [vmem:[%s1185_s0] sm:$0xff]  ;;  %911 = vmatprep.subr.mxu0 %v983_v2  ;;  %916 = vmatprep.subr.mxu1 %v983_v2  ;;  %s985_s0 = smov 96   ;;  %s986_s28 = smov 64   ;;  %vm49_vm2 = vcmask 261120   ;;  %vm51_vm3 = vcmask 392192   ;;  %vm53_vm4 = vcmask 523264   ;;  %vm882_vm11 = vmneg %vm47_vm1 }
   0x2   :  { %34 = vrot.lane.b32.xlu1 %v26_v0, %s981_s26  ;;  %28 = vrot.lane.b32.xlu0 %v26_v0, %s982_s27  ;;  %v1040_v1 = vcombine.high %v26_v0, %v26_v0  ;;  %s988_s29 = smov 48   ;;  %s989_s30 = smov 32   ;;  %v1061_v4 = vld [vmem:[%s1186_s6] sm:$0xff]  ;;  %v48_v7 = vsel %vm47_vm1, 0.0, %v26_v0  ;;  %vm55_vm5 = vcmask 654336   ;;  %vm57_vm6 = vcmask 785408  }
   0x3   :  { %913 = vmatprep.mubr.msk.f32.mxu0 %vm984_vm0, %v983_v2  ;;  %918 = vmatprep.mubr.msk.f32.mxu1 %vm984_vm0, %v983_v2  ;;  %s990_s8 = smov 16   ;;  %vm59_vm7 = vcmask 916480   ;;  %vm89_vm8 = vcmask 1043456   ;;  %v84_v23 = vld [vmem:[%s1187_s1] sm:$0xff]  ;;  %vm85_vm9 = vcmask 31744   ;;  %v873_v29 = vld [vmem:[%s1187_s1 + $0x8] sm:$0xff] }
   0x4   :  { %970 = vset.pattern.permute.xlu0 %v987_v3  ;;  %v878_v35 = vld [vmem:[%s1187_s1 + $0x10] sm:$0xff]  ;;  %v991_v44 = vmov 1   ;;  %vm334_vm10 = vcmask 64512   ;;  %v881_v49 = vld [vmem:[%s1188_s2 + $0x8] sm:$0xff]  ;;  %v328_v50 = vld [vmem:[%s1188_s2] sm:$0xff] }
   0x5   :  { %v886_v52 = vld [vmem:[%s1188_s2 + $0x10] sm:$0xff] }
   0x6   :  { %31 = vrot.lane.b32.xlu0 %v26_v0, %s985_s0  ;;  %38 = vrot.lane.b32.xlu1 %v1040_v1, %s986_s28 }
   0xa   :  { %41 = vrot.lane.b32.xlu0 %v1040_v1, %s988_s29  ;;  %44 = vrot.lane.b32.xlu1 %v1040_v1, %s989_s30 }
   0xe   :  { %71 = vrot.lane.b32.xlu0 %v26_v0, %s986_s28  ;;  %61 = vrot.lane.b32.xlu1 %v1040_v1, %s990_s8 }
  0x12   :  { %321 = vperm.xlu0 %970, %v1061_v4  }
  0x16   :  { %971 = vset.pattern.permute.xlu0 %v991_v44 }
  0x17   :  { %562 = vperm.xlu0 %971, %v1061_v4  }
  0x74   :  { %v35_v5 = vpop.permute.xlu1 %34  ;;  %v29_v6 = vpop.permute.xlu0 %28 }
  0x75   :  { %v50_v8 = vsel %vm49_vm2, %v48_v7, %v29_v6  ;;  %v64_v9 = vsel %vm47_vm1, %v26_v0, %v29_v6  ;;  %v992_v7 = vmov 2  }
  0x76   :  { %972 = vset.pattern.permute.xlu1 %v992_v7 }
  0x78   :  { %v32_v10 = vpop.permute.xlu0 %31  ;;  %v39_v11 = vpop.permute.xlu1 %38 }
  0x79   :  { %v52_v12 = vsel %vm51_vm3, %v50_v8, %v32_v10  ;;  %v65_v13 = vsel %vm49_vm2, %v64_v9, %v32_v10  ;;  %v75_v20 = vsel %vm47_vm1, %v29_v6, %v32_v10 }
  0x7a   :  { %v54_v14 = vsel %vm53_vm4, %v52_v12, %v35_v5  ;;  %v66_v15 = vsel %vm51_vm3, %v65_v13, %v35_v5  ;;  %v76_v26 = vsel %vm49_vm2, %v75_v20, %v35_v5  ;;  %v993_v12 = vmov 3   ;;  %v788_v13 = vld [vmem:[%s1190_s5] sm:$0xff] }
  0x7b   :  { %v56_v16 = vsel %vm55_vm5, %v54_v14, %v39_v11  ;;  %v67_v17 = vsel %vm53_vm4, %v66_v15, %v39_v11  ;;  %v592_v11 = vld [vmem:[%s1189_s3] sm:$0xff]  ;;  %973 = vset.pattern.permute.xlu0 %v993_v12 }
  0x7c   :  { %v42_v18 = vpop.permute.xlu0 %41  ;;  %v45_v19 = vpop.permute.xlu1 %44 }
  0x7d   :  { %v58_v21 = vsel %vm57_vm6, %v56_v16, %v42_v18  ;;  %v68_v22 = vsel %vm55_vm5, %v67_v17, %v42_v18 }
  0x7e   :  { %v60_v24 = vsel %vm59_vm7, %v58_v21, %v45_v19  ;;  %v69_v25 = vsel %vm57_vm6, %v68_v22, %v45_v19 }
  0x7f   :  { %912 = vmatpush3.msk.msra.mxu0 %vm89_vm8, %v60_v24 }
  0x80   :  { %v72_v27 = vpop.permute.xlu0 %71  ;;  %v62_v28 = vpop.permute.xlu1 %61  ;;  %914 = vmatmul.mubr.msk.f32.vlgmr.msra.gmra.mrb[0].mxu0 %vm85_vm9, %v84_v23  ;;  %921 = vmatprep.subr.mxu0 %v983_v2 }
  0x81   :  { %v77_v30 = vsel %vm51_vm3, %v76_v26, %v72_v27  ;;  %v1090_v31 = vsel %vm59_vm7, %v69_v25, %v62_v28  ;;  %923 = vmatprep.mubr.msk.f32.mxu0 %vm984_vm0, %v983_v2 }
  0x82   :  { %v78_v32 = vsel %vm53_vm4, %v77_v30, %v42_v18  ;;  %917 = vmatpush3.msk.msra.mxu1 %vm89_vm8, %v1090_v31 }
  0x83   :  { %v79_v33 = vsel %vm55_vm5, %v78_v32, %v45_v19  ;;  %919 = vmatmul.mubr.msk.f32.vlgmr.msra.gmra.mrb[0].mxu1 %vm85_vm9, %v873_v29  ;;  %926 = vmatprep.subr.mxu1 %v983_v2  ;;  %v671_v19 = vld [vmem:[%s1191_s4] sm:$0xff] }
  0x84   :  { %v80_v34 = vsel %vm57_vm6, %v79_v33, %v62_v28  ;;  %928 = vmatprep.mubr.msk.f32.mxu1 %vm984_vm0, %v983_v2 }
  0x85   :  { %v81_v36 = vsel %vm59_vm7, %v80_v34, %v1040_v1 }
  0x86   :  { %922 = vmatpush3.msk.msra.mxu0 %vm89_vm8, %v81_v36 }
  0x87   :  { %924 = vmatmul.mubr.msk.f32.vlgmr.msra.gmra.mrb[2].mxu0 %vm85_vm9, %v878_v35  ;;  %931 = vmatprep.subr.mxu0 %v983_v2 }
  0x88   :  { %933 = vmatprep.mubr.msk.f32.mxu0 %vm984_vm0, %v983_v2 }
  0x91   :  { %v322_v43 = vpop.permute.xlu0 %321 }
  0x96   :  { %v563_v60 = vpop.permute.xlu0 %562 }
 0x153   :  { %v159_v37 = vpop.f32.mrb[0].mxu0 }
 0x154   :  { %v915_v38 = vpop.f32.mrb[1].mxu0 }
 0x156   :  { %v235_v39 = vpop.f32.mrb[0].mxu1 }
 0x157   :  { %v236_v40 = vadd.f32 %v235_v39, %v159_v37  ;;  %v920_v41 = vpop.f32.mrb[1].mxu1 }
 0x15a   :  { %v313_v42 = vpop.f32.mrb[2].mxu0 }
 0x15b   :  { %v317_v45 = vadd.f32 %v313_v42, %v236_v40  ;;  %v925_v46 = vpop.f32.mrb[3].mxu0 }
 0x15d   :  { %v324_v47 = vadd.f32 %v322_v43, %v317_v45 }
 0x15f   :  { %v325_v48 = vmax.f32 %v324_v47, 0.0 }
 0x161   :  { %330 = vrot.lane.b32.xlu1 %v325_v48, %s990_s8  ;;  %932 = vmatpush3.msra.mxu0 %v325_v48 }
 0x162   :  { %934 = vmatmul.mubr.msk.f32.vlgmr.msra.gmra.mrb[4].mxu0 %vm334_vm10, %v881_v49  ;;  %941 = vmatprep.subr.mxu0 %v983_v2 }
 0x163   :  { %943 = vmatprep.mubr.msk.f32.mxu0 %vm984_vm0, %v983_v2 }
 0x165   :  { %483 = vrot.lane.b32.xlu1 %v325_v48, %s982_s27 }
 0x1d3   :  { %v331_v51 = vpop.permute.xlu1 %330 }
 0x1d4   :  { %927 = vmatpush3.msk.msra.mxu1 %vm882_vm11, %v331_v51 }
 0x1d5   :  { %929 = vmatmul.mubr.msk.f32.vlgmr.msra.gmra.mrb[2].mxu1 %vm334_vm10, %v328_v50  ;;  %936 = vmatprep.subr.mxu1 %v983_v2 }
 0x1d6   :  { %938 = vmatprep.mubr.msk.f32.mxu1 %vm984_vm0, %v983_v2 }
 0x1d7   :  { %v484_v53 = vpop.permute.xlu1 %483 }
 0x1d8   :  { %937 = vmatpush3.msk.msra.mxu1 %vm59_vm7, %v484_v53 }
 0x1d9   :  { %939 = vmatmul.mubr.msk.f32.vlgmr.msra.gmra.mrb[4].mxu1 %vm334_vm10, %v886_v52  ;;  %946 = vmatprep.subr.mxu1 %v983_v2 }
 0x1da   :  { %948 = vmatprep.mubr.msk.f32.mxu1 %vm984_vm0, %v983_v2 }
 0x235   :  { %v477_v54 = vpop.f32.mrb[4].mxu0 }
 0x236   :  { %v935_v55 = vpop.f32.mrb[5].mxu0 }
 0x2a8   :  { %v404_v56 = vpop.f32.mrb[2].mxu1 }
 0x2a9   :  { %v478_v57 = vadd.f32 %v477_v54, %v404_v56  ;;  %v930_v58 = vpop.f32.mrb[3].mxu1 }
 0x2ac   :  { %v556_v59 = vpop.f32.mrb[4].mxu1 }
 0x2ad   :  { %v560_v61 = vadd.f32 %v556_v59, %v478_v57  ;;  %v940_v62 = vpop.f32.mrb[5].mxu1 }
 0x2af   :  { %v1139_v63 = vadd.f32 %v563_v60, %v560_v61 }
 0x2b1   :  { %v566_v0 = vand.u32 2147483647, %v1139_v63 }
 0x2b3   :  { %568 = vrot.lane.b32.xlu1 %v566_v0, %s982_s27 }
 0x325   :  { %v569_v1 = vpop.permute.xlu1 %568 }
 0x326   :  { %v571_v3 = vadd.f32 %v569_v1, %v566_v0 }
 0x328   :  { %573 = vrot.lane.b32.xlu1 %v571_v3, %s985_s0 }
 0x32c   :  { %594 = vperm.xlu1 %972, %v1061_v4  }
 0x39a   :  { %v574_v5 = vpop.permute.xlu1 %573 }
 0x39b   :  { %v576_v6 = vadd.f32 %v574_v5, %v571_v3 }
 0x39d   :  { %578 = vrot.lane.b32.xlu0 %v576_v6, %s986_s28 }
 0x3a1   :  { %673 = vperm.xlu0 %973, %v1061_v4  }
 0x3ab   :  { %v595_v14 = vpop.permute.xlu1 %594 }
 0x40f   :  { %v579_v8 = vpop.permute.xlu0 %578 }
 0x410   :  { %v581_v9 = vadd.f32 %v579_v8, %v576_v6 }
 0x412   :  { %v582_v10 = vmul.f32 0.125, %v581_v9 }
 0x414   :  { %942 = vmatpush3.msra.mxu0 %v582_v10  ;;  %v583_v24 = vsel %vm47_vm1, %v582_v10, 0.0 }
 0x415   :  { %944 = vmatmul.mubr.msk.f32.vlgmr.msra.gmra.mrb[6].mxu0 %vm334_vm10, %v592_v11  ;;  %951 = vmatprep.subr.mxu0 %v983_v2  ;;  %v584_v26 = vrot.slane %v583_v24, 4 }
 0x416   :  { %952 = vmatpush3.msk.msra.mxu0 %vm89_vm8, %v1090_v31  ;;  %953 = vmatprep.mubr.msk.f32.mxu0 %vm984_vm0, %v983_v2  ;;  %v994_v2 = vmov 4  }
 0x417   :  { %974 = vset.pattern.permute.xlu1 %v994_v2  ;;  %975 = vset.pattern.permute.xlu0 %v994_v2  ;;  %v585_v28 = vadd.f32 %v584_v26, %v583_v24 }
 0x419   :  { %954 = vmatmul.mubr.msk.f32.vlgmr.msra.gmra.mrb[8].mxu0 %vm85_vm9, %v788_v13  ;;  %v586_v29 = vrot.slane %v585_v28, 2 }
 0x41b   :  { %v587_v31 = vadd.f32 %v586_v29, %v585_v28 }
 0x41d   :  { %v588_v33 = vrot.slane %v587_v31, 1 }
 0x41f   :  { %v589_v34 = vadd.f32 %v588_v33, %v587_v31 }
 0x420   :  { %v674_v20 = vpop.permute.xlu0 %673 }
 0x421   :  { %v591_v35 = vmul.f32 0.125, %v589_v34 }
 0x4e8   :  { %v666_v15 = vpop.f32.mrb[6].mxu0 }
 0x4e9   :  { %v667_v16 = vadd.f32 %v666_v15, %v595_v14  ;;  %v945_v17 = vpop.f32.mrb[7].mxu0 }
 0x4eb   :  { %v670_v18 = vmax.f32 %v667_v16, 0.0 }
 0x4ec   :  { %v862_v38 = vpop.f32.mrb[8].mxu0 }
 0x4ed   :  { %947 = vmatpush3.msra.mxu1 %v670_v18  ;;  %v955_v39 = vpop.f32.mrb[9].mxu0 }
 0x4ee   :  { %949 = vmatmul.mubr.msk.f32.vlgmr.msra.gmra.mrb[6].mxu1 %vm334_vm10, %v671_v19 }
 0x5c1   :  { %v745_v21 = vpop.f32.mrb[6].mxu1 }
 0x5c2   :  { %v746_v22 = vadd.f32 %v745_v21, %v674_v20  ;;  %v950_v23 = vpop.f32.mrb[7].mxu1 }
 0x5c4   :  { %v749_v25 = vsub.f32 0.0, %v746_v22 }
 0x5c6   :  { %v750_v27 = vmul.f32 1.442695, %v749_v25 }
 0x5c8   :  { %977 = vpow2.f32 %v750_v27 }
 0x5d2   :  { %v978_v30 = vpop.eup %977 }
 0x5d3   :  { %v752_v32 = vadd.f32 1.0, %v978_v30 }
 0x5d5   :  { %979 = vrcp.f32 %v752_v32 }
 0x5df   :  { %v980_v36 = vpop.eup %979 }
 0x5e0   :  { %v754_v37 = vmul.f32 %v980_v36, %v591_v35 }
 0x5e2   :  { %762 = vrot.lane.b32.xlu0 %v754_v37, %s988_s29  ;;  %756 = vrot.lane.b32.xlu1 %v754_v37, %s990_s8 }
 0x5e6   :  { %768 = vrot.lane.b32.xlu0 %v754_v37, %s981_s26  ;;  %759 = vrot.lane.b32.xlu1 %v754_v37, %s989_s30 }
 0x5ea   :  { %774 = vrot.lane.b32.xlu0 %v754_v37, %s982_s27  ;;  %765 = vrot.lane.b32.xlu1 %v754_v37, %s986_s28 }
 0x5ee   :  { %771 = vrot.lane.b32.xlu1 %v754_v37, %s985_s0 }
 0x5f2   :  { %790 = vperm.xlu1 %974, %v1061_v4  }
 0x654   :  { %v757_v40 = vpop.permute.xlu1 %756  ;;  %v763_v41 = vpop.permute.xlu0 %762 }
 0x655   :  { %v777_v42 = vsel %vm47_vm1, %v754_v37, %v757_v40 }
 0x658   :  { %v760_v43 = vpop.permute.xlu1 %759  ;;  %v769_v45 = vpop.permute.xlu0 %768 }
 0x659   :  { %v778_v44 = vsel %vm49_vm2, %v777_v42, %v760_v43 }
 0x65a   :  { %v779_v46 = vsel %vm51_vm3, %v778_v44, %v763_v41 }
 0x65c   :  { %v766_v47 = vpop.permute.xlu1 %765  ;;  %v775_v52 = vpop.permute.xlu0 %774 }
 0x65d   :  { %v780_v48 = vsel %vm53_vm4, %v779_v46, %v766_v47 }
 0x65e   :  { %v781_v49 = vsel %vm55_vm5, %v780_v48, %v769_v45 }
 0x660   :  { %v772_v50 = vpop.permute.xlu1 %771 }
 0x661   :  { %v782_v51 = vsel %vm57_vm6, %v781_v49, %v772_v50 }
 0x662   :  { %v783_v4 = vsel %vm59_vm7, %v782_v51, %v775_v52 }
 0x663   :  { %v784_v53 = vsub.f32 0.0, %v783_v4 }
 0x665   :  { %v785_v54 = vmax.f32 %v1139_v63, %v784_v53 }
 0x667   :  { %v786_v55 = vmin.f32 %v785_v54, %v783_v4 }
 0x669   :  { %v787_v57 = vsub.f32 %v1139_v63, %v786_v55 }
 0x671   :  { %v791_v56 = vpop.permute.xlu1 %790 }
 0x672   :  { %v863_v58 = vadd.f32 %v862_v38, %v791_v56 }
 0x674   :  { %v866_v59 = vadd.f32 %v863_v58, %v787_v57 }
 0x676   :  { %v867_v60 = vmax.f32 %v866_v59, 0.0 }
 0x678   :  { %868 = vst [vmem:[%s1192_s7] sm:$0xff] %v867_v60 }

</bundles_post_ra>
